<compile_context>
chip_gen: v6e
topology: v6e:2x2x1
jax: 0.10.0
libtpu: 0.0.40
codegen_flags: <defaults>
</compile_context>

<pallas_src>
import jax
import jax.numpy as jnp
from jax.experimental import pallas as pl
from jax.experimental.pallas import tpu as pltpu


def _chomp_copy_kernel(x_ref, o_ref):
    # x_ref / o_ref : (Rt, Lt) tiles covering the same element region
    # (slice offset is 0), so this is a pure tile copy.
    o_ref[...] = x_ref[...]


def _round_up(x: int, m: int) -> int:
    return ((x + m - 1) // m) * m


def _choose_tiles(rows: int, l_out: int, itemsize: int):
    """Pick (Rt, Lt): lane-dense, full-width-first, VMEM-safe on all gens."""
    LANE = 128
    # Packing-aware sublane multiple: f32 -> 8, bf16 -> 16, int8/fp8 -> 32.
    sub = 8 * max(1, 4 // itemsize)

    # One tile <= 4 MiB -> double-buffered footprint (2x in + 2x out) <= 16 MiB,
    # inside the 32 MiB scoped-VMEM limit we set, on v5e/v6e/v7x alike, while
    # amortizing the ~0.35 us/grid-step pipeline overhead.
    tile_budget = 4 * 1024 * 1024

    # Lane tile: full width first (one contiguous, unmasked output DMA per row
    # block; kills ragged remainder columns).  Fall back to a 128-multiple cap
    # only if a full-width tile at Rt = one sublane group would blow the budget.
    full_lt = _round_up(l_out, LANE)
    if full_lt * sub * itemsize <= tile_budget:
        lt = full_lt
    else:
        lt = max(LANE, ((tile_budget // (sub * itemsize)) // LANE) * LANE)

    # Then grow the row tile to fill the budget.
    max_rows = max(sub, tile_budget // (lt * itemsize))
    rt = min(_round_up(rows, sub), (max_rows // sub) * sub)
    rt = max(rt, sub)

    # Megacore (v7x): ensure >= 2 grid points along a parallel axis when the
    # shape allows it, so both TensorCores issue DMAs.
    if (-(-rows // rt)) * (-(-l_out // lt)) < 2:
        if rows >= 2 * sub:
            rt = _round_up(-(-rows // 2), sub)
        elif lt >= 2 * LANE:
            lt = _round_up(-(-lt // 2), LANE)

    return rt, lt


def chomp1d(x: jnp.ndarray, chomp_size: int) -> jnp.ndarray:
    """Pallas equivalent of Chomp1d(chomp_size)(x) for x of shape (N, C, L)."""
    assert x.ndim == 3, "expected (batch, channels, length)"
    n, c, l = x.shape
    # PyTorch's `x[:, :, :-0]` is an empty tensor, so chomp_size == 0 is not a
    # meaningful identity; TCN always uses chomp_size >= 1 (== padding).
    assert 0 < chomp_size < l, "chomp_size must be in (0, L)"
    l_out = l - chomp_size

    rows = n * c
    x2 = x.reshape(rows, l)  # free, contiguous reshape

    itemsize = jnp.dtype(x.dtype).itemsize
    rt, lt = _choose_tiles(rows, l_out, itemsize)
    grid = (pl.cdiv(rows, rt), pl.cdiv(l_out, lt))

    out2 = pl.pallas_call(
        _chomp_copy_kernel,
        out_shape=jax.ShapeDtypeStruct((rows, l_out), x.dtype),
        grid=grid,
        # Identical index maps: since the slice offset is 0, input and output
        # blocks line up exactly.  Blocks past L_out / L are partial and
        # handled (padded reads / masked writes) by Pallas.
        in_specs=[pl.BlockSpec((rt, lt), lambda r, li: (r, li))],
        out_specs=pl.BlockSpec((rt, lt), lambda r, li: (r, li)),
        compiler_params=pltpu.CompilerParams(
            dimension_semantics=("parallel", "parallel"),
            # 32 MiB: raises v5e's 16 MiB default (128 MiB physical, safe),
            # equals the v6e/v7x defaults -> portable headroom for the 16 MiB
            # double-buffered footprint without risking v7x's 64 MiB physical.
            vmem_limit_bytes=32 * 1024 * 1024,
        ),
    )(x2)

    return out2.reshape(n, c, l_out)


if __name__ == "__main__":
    key = jax.random.PRNGKey(0)

    # Primary small test, matching the module's intended usage.
    chomp_size = 3
    batch, channels, length = 2, 4, 16
    x = jax.random.normal(key, (batch, channels, length), dtype=jnp.float32)

    y = chomp1d(x, chomp_size)
    y = jax.block_until_ready(y)

    y_ref = x[:, :, :-chomp_size]
    assert y.shape == (batch, channels, length - chomp_size), y.shape
    assert y.dtype == x.dtype
    assert jnp.array_equal(y, y_ref), "mismatch vs reference slice (small)"

    # Second test: full-width lane tile (2176) + 2 row-grid points (megacore)
    # + ragged lane tail beyond L_out (masked store) and beyond L (padded read).
    key2 = jax.random.PRNGKey(1)
    x2 = jax.random.normal(key2, (2, 16, 2100), dtype=jnp.float32)
    y2 = jax.block_until_ready(chomp1d(x2, 5))
    assert jnp.array_equal(y2, x2[:, :, :-5]), "mismatch vs reference (tiled)"

    # Third test: bf16 (sublane packing = 16) + lane-axis split path.
    key3 = jax.random.PRNGKey(2)
    x3 = jax.random.normal(key3, (2, 8, 200), dtype=jnp.bfloat16)
    y3 = jax.block_until_ready(chomp1d(x3, 7))
    assert y3.dtype == jnp.bfloat16
    assert jnp.array_equal(y3, x3[:, :, :-7]), "mismatch vs reference (bf16)"

    print("KERNEL_OK")
</pallas_src>

<mosaic_0001>
module attributes {stable_mosaic.version = 11 : i64} {
  func.func @_chomp_copy_kernel(%arg0: i32, %arg1: i32, %arg2: memref<8x128xf32, #tpu.memory_space<vmem>>, %arg3: memref<8x128xf32, #tpu.memory_space<vmem>>) attributes {dimension_semantics = [#tpu.dimension_semantics<parallel>, #tpu.dimension_semantics<parallel>], iteration_bounds = array<i64: 1, 1>, scalar_prefetch = 0 : i64, scratch_operands = 0 : i64, tpu.core_type = #tpu.core_type<tc>, window_params = [{transform_indices = @transform_0, window_bounds = array<i64: 8, 128>}, {transform_indices = @transform_1, window_bounds = array<i64: 8, 128>}]} {
    %c0 = arith.constant 0 : index
    %c0_0 = arith.constant 0 : index
    %0 = vector.load %arg2[%c0, %c0_0] : memref<8x128xf32, #tpu.memory_space<vmem>>, vector<8x128xf32>
    %c0_1 = arith.constant 0 : index
    %c0_2 = arith.constant 0 : index
    %1 = vector.load %arg3[%c0_1, %c0_2] : memref<8x128xf32, #tpu.memory_space<vmem>>, vector<8x128xf32>
    tpu.vector_store %arg3[%c0_1, %c0_2], %0 {strides = array<i32>} : memref<8x128xf32, #tpu.memory_space<vmem>>, vector<8x128xf32>,
    return
  }
  func.func @transform_0(%arg0: i32, %arg1: i32) -> (i32, i32) {
    %c0_i32 = arith.constant 0 : i32
    return %arg0, %arg1 : i32, i32
  }
  func.func @transform_1(%arg0: i32, %arg1: i32) -> (i32, i32) {
    %c0_i32 = arith.constant 0 : i32
    return %arg0, %arg1 : i32, i32
  }
}

</mosaic_0001>

<bundles_post_ra>
// kernel: tpu_custom_call.1
= control target key start
LH: loop header
LB: loop body
LE: loop exit
PB: predicated region body
PF: predicated region fallthrough
CT: control target
= control target key end

     0   :  { %6 = vsyncpa [#allocation3], 0  ;;  %s102_s0 = inlined_call_operand.hbm [shape: f32[8,16], index: 0, kind: input, shape index: {}]   ;;  %s103_s1 = inlined_call_operand.hbm [shape: f32[8,13], index: 1, kind: output, shape index: {}]  }
   0x1   :  { %7 = vsyncpa [#allocation4], 0  ;;  %s84_s6 = smov [#allocation2]  }
   0x2   :  { %s14_s7 = sshll.u32 %s84_s6, 4  ;;  %s15_s7 = int_to_ptr.vmem [resolvable:$true] %s14_s7 }
   0x3   :  { %s48_s8 = scalar_lea.vmem %s15_s7, 128  ;;  %p53_p1 = scmp.lt.s32.totalorder %s15_s7, %s15_s7 }
   0x4   :  { %p49_p0 = scmp.ne.s32.totalorder %s15_s7, %s48_s8  ;;  %p54_p2 = scmp.lt.s32.totalorder %s48_s8, %s48_s8 }
   0x6   :  { %p55_p3 = por %p54_p2, %p53_p1 }
   0x8   :  { %p56_p4 = pnand %p55_p3, %p49_p0 }
   0xa   :  { %59 = shalt.err (!%p56_p4)
}
   0xb   :  { %17 = dma.hbm_to_vmem [thread:$0]  %s102_s0, 128, %s15_s7, [#allocation3]  }
   0xc   :  { %80 = dma.done.wait [#allocation3], 128  }
   0xd   :  { %81 = vsyncadd [#allocation3], 4294967168  ;;  %s85_s11 = smov [#allocation5]   ;;  %v21_v0 = vld [vmem:[#allocation2] sm:$0xff] }
   0xe   :  { %s29_s12 = sshll.u32 %s85_s11, 4  ;;  %22 = vst [vmem:[#allocation5] sm:$0xff] %v21_v0  ;;  %s30_s12 = int_to_ptr.vmem [resolvable:$true] %s29_s12 }
   0xf   :  { %s60_s13 = scalar_lea.vmem %s30_s12, 128  ;;  %p65_p6 = scmp.lt.s32.totalorder %s30_s12, %s30_s12 }
  0x10   :  { %p61_p5 = scmp.ne.s32.totalorder %s30_s12, %s60_s13  ;;  %p66_p7 = scmp.lt.s32.totalorder %s60_s13, %s60_s13 }
  0x12   :  { %p67_p8 = por %p66_p7, %p65_p6 }
  0x14   :  { %p68_p9 = pnand %p67_p8, %p61_p5 }
  0x16   :  { %71 = shalt.err (!%p68_p9)
}
  0x17   :  { %32 = dma.vmem_to_hbm [thread:$0]  %s30_s12, 128, %s103_s1, [#allocation4]  }
  0x18   :  { %82 = dma.done.wait [#allocation4], 128  }
  0x19   :  { %83 = vsyncadd [#allocation4], 4294967168 }
  0x1a   :  { %36 = vsyncpa [#allocation3], 1 }
  0x1b   :  { %37 = vsyncpa [#allocation4], 1 }

</bundles_post_ra>
